<compile_context>
chip_gen: v7x
topology: tpu7x:2x2x1
jax: 0.10.0
libtpu: 0.0.40
codegen_flags: <defaults>
</compile_context>

<pallas_src>
import functools

import jax
import jax.numpy as jnp
from jax.experimental import pallas as pl
from jax.experimental.pallas import tpu as pltpu


# ------------------------------ helpers -------------------------------------

def _round_up(x, m):
    return (x + m - 1) // m * m


def _vmem_capacity_bytes():
    try:
        return int(pltpu.get_tpu_info().vmem_capacity_bytes)
    except Exception:
        return 64 << 20          # conservative default (v7x per-core VMEM)


def _vmem_limit_bytes(need_bytes):
    cap = _vmem_capacity_bytes()
    return int(min(max(2 * need_bytes, 32 << 20), cap - (8 << 20)))


# ------------------------------ kernels -------------------------------------

def _gemm_bias_kernel(x_ref, w_ref, b_ref, o_ref):
    # x:(tm, K) bf16, w:(K, D) bf16 (VMEM-resident), b:(1, D) f32 -> o:(tm, D).
    acc = jnp.dot(x_ref[...], w_ref[...], preferred_element_type=jnp.float32)
    o_ref[...] = (acc + b_ref[...]).astype(o_ref.dtype)


# --------------------------- module wrapper ----------------------------------

class PatchEmbedPallas:
    """Image-to-patch embedding (Conv3d with kernel == stride) via Pallas."""

    def __init__(self, img_size=16, patch_size=8, in_chans=3, embed_dim=128,
                 num_frames=4, tubelet_size=2, key=None):
        self.img_size = (img_size, img_size)
        self.patch_size = (patch_size, patch_size)
        self.tubelet_size = int(tubelet_size)
        self.in_chans = in_chans
        self.embed_dim = embed_dim
        self.num_patches = ((img_size // patch_size) * (img_size // patch_size)
                            * (num_frames // self.tubelet_size))

        key = jax.random.PRNGKey(0) if key is None else key
        kw, kb = jax.random.split(key)
        fan_in = in_chans * self.tubelet_size * patch_size * patch_size
        # Conv3d weight (D, C, t, p, p); bias (D,).  Deterministic synthetic init.
        self.weight = (jax.random.normal(
            kw, (embed_dim, in_chans, self.tubelet_size, patch_size, patch_size),
            dtype=jnp.float32) / jnp.sqrt(jnp.float32(fan_in)))
        self.bias = jax.random.normal(kb, (embed_dim,), dtype=jnp.float32) * 0.02

        # GEMM operands hoisted out of the forward pass (computed once).
        self.w_kd = self.weight.reshape(embed_dim, fan_in).T.astype(jnp.bfloat16)
        self.bias2d = self.bias.reshape(1, embed_dim).astype(jnp.float32)

        # (x.shape, x.dtype, out_dtype) -> chosen jitted forward fn.
        self._fn_cache = {}

    # -------- primary path: patch extraction fused into the kernel ----------

    def _forward_fused(self, x, out_dtype=jnp.bfloat16):
        B, C, T, H, W = x.shape
        t = self.tubelet_size
        ph, pw = self.patch_size
        Tp, Hp, Wp = T // t, H // ph, W // pw
        D = self.embed_dim
        K = C * t * ph * pw
        npp = Hp * Wp                      # patches per (batch, tubelet) strip

        def kernel(x_ref, w_ref, b_ref, o_ref):
            xs = x_ref[0]                                    # (C, t, H, W)
            # (C,t,Hp,ph,Wp,pw) -> (Hp,Wp,C,t,ph,pw) -> (Hp*Wp, K): same feature
            # order (c,dt,dh,dw) as the flattened Conv3d weight.  Pure relayout
            # work on the VMEM-resident strip (free filler while DMA-bound).
            x6 = xs.reshape(C, t, Hp, ph, Wp, pw)
            xp = jnp.transpose(x6, (2, 4, 0, 1, 3, 5))
            patches = xp.reshape(npp, K).astype(jnp.bfloat16)
            acc = jnp.dot(patches, w_ref[...], preferred_element_type=jnp.float32)
            o_ref[0, 0] = (acc + b_ref[...]).astype(o_ref.dtype)

        itm_in = jnp.dtype(x.dtype).itemsize
        itm_out = jnp.dtype(out_dtype).itemsize
        x_blk = itm_in * C * t * _round_up(H, 8) * _round_up(W, 128)
        relayout_tmp = 3 * itm_in * C * t * H * W * max(1, 128 // pw)
        need = (2 * x_blk + relayout_tmp
                + 2 * 2 * _round_up(K, 128) * _round_up(D, 128)     # bf16 weight x2
                + 2 * itm_out * _round_up(npp, 16) * _round_up(D, 128)
                + 4 * _round_up(D, 128))

        out = pl.pallas_call(
            kernel,
            out_shape=jax.ShapeDtypeStruct((B, Tp, npp, D), out_dtype),
            grid_spec=pltpu.PrefetchScalarGridSpec(
                num_scalar_prefetch=0,
                grid=(B, Tp),
                in_specs=[
                    # Native NCTHW strip, read straight from HBM once.
                    pl.BlockSpec((1, C, t, H, W), lambda b, tp: (b, 0, tp, 0, 0)),
                    pl.BlockSpec((K, D), lambda b, tp: (0, 0)),   # resident weight
                    pl.BlockSpec((1, D), lambda b, tp: (0, 0)),   # resident bias
                ],
                out_specs=pl.BlockSpec((1, 1, npp, D), lambda b, tp: (b, tp, 0, 0)),
            ),
            compiler_params=pltpu.CompilerParams(
                dimension_semantics=("parallel", "parallel"),
                vmem_limit_bytes=_vmem_limit_bytes(need),
            ),
        )(x, self.w_kd, self.bias2d)
        # (B, Tp, Hp*Wp, D) -> (B, N, D): contiguous merge, free view.
        return out.reshape(B, Tp * npp, D)

    # -------- fallback path: wrapper-side extraction + plain GEMM ----------

    def _forward_gemm(self, x, out_dtype=jnp.bfloat16):
        B, C, T, H, W = x.shape
        t = self.tubelet_size
        ph, pw = self.patch_size
        Tp, Hp, Wp = T // t, H // ph, W // pw
        D = self.embed_dim
        K = C * t * ph * pw
        N = Tp * Hp * Wp
        M = B * N

        # Single fused XLA pass (reshape + transpose + convert) under jit;
        # feature order (c, dt, dh, dw) matches the flattened Conv3d weight.
        xp = x.reshape(B, C, Tp, t, Hp, ph, Wp, pw).transpose(0, 2, 4, 6, 1, 3, 5, 7)
        patches = xp.reshape(M, K).astype(jnp.bfloat16)

        # Lane/sublane-aligned row tiles; >= 2-4 grid steps for mid-size M so both
        # v7x TensorCores keep pipelining.  1024-row tiles only on 128 MiB parts.
        cap_rows = 1024 if _vmem_capacity_bytes() >= (96 << 20) else 512
        if M >= 4 * cap_rows:
            tm = cap_rows
        elif M >= 1024:
            tm = 256
        elif M >= 256:
            tm = 128
        else:
            tm = M                      # single full-dim block (always legal)

        itm_out = jnp.dtype(out_dtype).itemsize
        need = (2 * 2 * _round_up(tm, 16) * _round_up(K, 128)        # bf16 act x2
                + 2 * 2 * _round_up(K, 128) * _round_up(D, 128)      # bf16 weight x2
                + 2 * itm_out * _round_up(tm, 16) * _round_up(D, 128)
                + 4 * _round_up(D, 128))

        out = pl.pallas_call(
            _gemm_bias_kernel,
            out_shape=jax.ShapeDtypeStruct((M, D), out_dtype),
            grid_spec=pltpu.PrefetchScalarGridSpec(
                num_scalar_prefetch=0,
                grid=(pl.cdiv(M, tm),),          # partial last block, no jnp.pad
                in_specs=[
                    pl.BlockSpec((tm, K), lambda i: (i, 0)),     # activation tile
                    pl.BlockSpec((K, D), lambda i: (0, 0)),      # resident weight
                    pl.BlockSpec((1, D), lambda i: (0, 0)),      # resident bias
                ],
                out_specs=pl.BlockSpec((tm, D), lambda i: (i, 0)),
            ),
            compiler_params=pltpu.CompilerParams(
                dimension_semantics=("parallel",),
                vmem_limit_bytes=_vmem_limit_bytes(need),
            ),
        )(patches, self.w_kd, self.bias2d)
        return out.reshape(B, N, D)

    # ------------------------------ forward ---------------------------------

    def __call__(self, x, out_dtype=jnp.bfloat16):
        B, C, T, H, W = x.shape
        assert H == self.img_size[0] and W == self.img_size[1], (
            f"Input image size ({H}*{W}) doesn't match model "
            f"({self.img_size[0]}*{self.img_size[1]}).")
        assert C == self.in_chans, (C, self.in_chans)

        key = (x.shape, str(jnp.dtype(x.dtype)), str(jnp.dtype(out_dtype)))
        fn = self._fn_cache.get(key)
        if fn is not None:
            return fn(x)

        # First call at this signature: try the fused-extraction kernel, validate
        # against the always-lowerable GEMM path, and fall back if Mosaic rejects
        # the in-kernel relayout (shape-dependent support) or disagrees.
        gemm_fn = jax.jit(functools.partial(self._forward_gemm, out_dtype=out_dtype))
        fused_fn = jax.jit(functools.partial(self._forward_fused, out_dtype=out_dtype))
        y_gemm = gemm_fn(x)
        try:
            y_fused = fused_fn(x)
            ok = bool(jnp.allclose(y_fused.astype(jnp.float32),
                                   y_gemm.astype(jnp.float32),
                                   atol=1e-2, rtol=1e-2))
        except Exception:
            ok = False
        self._fn_cache[key] = fused_fn if ok else gemm_fn
        return y_fused if ok else y_gemm


# --------------------------- reference (pure JAX) ----------------------------

def _reference(x, weight, bias, tubelet, patch):
    B, C, T, H, W = x.shape
    D = weight.shape[0]
    out = jax.lax.conv_general_dilated(
        x.astype(jnp.float32),
        weight.astype(jnp.float32),
        window_strides=(tubelet, patch, patch),
        padding="VALID",
        dimension_numbers=("NCDHW", "OIDHW", "NCDHW"),
        precision=jax.lax.Precision.HIGHEST,
    ) + bias.reshape(1, D, 1, 1, 1)
    # flatten(2).transpose(1, 2)
    return out.reshape(B, D, -1).transpose(0, 2, 1)


# ------------------------------- main ----------------------------------------

if __name__ == "__main__":
    # Small shapes consistent with the module: B=2, C=3, T=4 frames,
    # 16x16 images, 8x8 patches, tubelet=2, embed_dim=128.
    B, C, T, H, W = 2, 3, 4, 16, 16
    patch, tubelet, embed_dim = 8, 2, 128

    key = jax.random.PRNGKey(0)
    kx, kp = jax.random.split(key)
    x = jax.random.normal(kx, (B, C, T, H, W), dtype=jnp.float32)

    mod = PatchEmbedPallas(
        img_size=H, patch_size=patch, in_chans=C, embed_dim=embed_dim,
        num_frames=T, tubelet_size=tubelet, key=kp,
    )

    y = jax.block_until_ready(mod(x))              # bf16 output by default

    y_ref = _reference(x, mod.weight, mod.bias, tubelet, patch)
    assert y.shape == (B, mod.num_patches, embed_dim), y.shape
    # bf16 GEMM inputs + bf16 output (f32 accumulation) vs. f32 conv reference.
    err = float(jnp.max(jnp.abs(y.astype(jnp.float32) - y_ref)))
    assert jnp.allclose(y.astype(jnp.float32), y_ref, atol=4e-2, rtol=4e-2), err
    print("KERNEL_OK")
</pallas_src>

<mosaic_0001>
module attributes {stable_mosaic.version = 11 : i64} {
  func.func @_gemm_bias_kernel(%arg0: i32, %arg1: memref<16x384xbf16, #tpu.memory_space<vmem>>, %arg2: memref<384x128xbf16, #tpu.memory_space<vmem>>, %arg3: memref<1x128xf32, #tpu.memory_space<vmem>>, %arg4: memref<16x128xbf16, #tpu.memory_space<vmem>>) attributes {dimension_semantics = [#tpu.dimension_semantics<parallel>], iteration_bounds = array<i64: 1>, scalar_prefetch = 0 : i64, scratch_operands = 0 : i64, tpu.core_type = #tpu.core_type<tc>, window_params = [{transform_indices = @transform_0, window_bounds = array<i64: 16, 384>}, {pipeline_mode = #tpu.pipeline_mode<synchronous>, transform_indices = @transform_1, window_bounds = array<i64: 384, 128>}, {pipeline_mode = #tpu.pipeline_mode<synchronous>, transform_indices = @transform_2, window_bounds = array<i64: 1, 128>}, {transform_indices = @transform_3, window_bounds = array<i64: 16, 128>}]} {
    %c0 = arith.constant 0 : index
    %c0_0 = arith.constant 0 : index
    %0 = vector.load %arg1[%c0, %c0_0] : memref<16x384xbf16, #tpu.memory_space<vmem>>, vector<16x384xbf16>
    %c0_1 = arith.constant 0 : index
    %c0_2 = arith.constant 0 : index
    %1 = vector.load %arg2[%c0_1, %c0_2] : memref<384x128xbf16, #tpu.memory_space<vmem>>, vector<384x128xbf16>
    %cst = arith.constant dense<0.000000e+00> : vector<16x128xf32>
    %2 = tpu.matmul %0, %1, %cst {dimension_numbers = #tpu.dot_dimension_numbers<[1], [0], [0], [1], [0, 0, 1, 1], [], []>} : vector<16x384xbf16>, vector<384x128xbf16>, vector<16x128xf32> -> vector<16x128xf32>
    %c0_3 = arith.constant 0 : index
    %c0_4 = arith.constant 0 : index
    %3 = vector.load %arg3[%c0_3, %c0_4] : memref<1x128xf32, #tpu.memory_space<vmem>>, vector<1x128xf32>
    %4 = vector.broadcast %3 : vector<1x128xf32> to vector<16x128xf32>
    %5 = arith.addf %2, %4 : vector<16x128xf32>
    %6 = arith.truncf %5 : vector<16x128xf32> to vector<16x128xbf16>
    %c0_5 = arith.constant 0 : index
    %c0_6 = arith.constant 0 : index
    %7 = vector.load %arg4[%c0_5, %c0_6] : memref<16x128xbf16, #tpu.memory_space<vmem>>, vector<16x128xbf16>
    tpu.vector_store %arg4[%c0_5, %c0_6], %6 {strides = array<i32>} : memref<16x128xbf16, #tpu.memory_space<vmem>>, vector<16x128xbf16>,
    return
  }
  func.func @transform_0(%arg0: i32) -> (i32, i32) {
    %c0_i32 = arith.constant 0 : i32
    %c0_i32_0 = arith.constant 0 : i32
    return %arg0, %c0_i32 : i32, i32
  }
  func.func @transform_1(%arg0: i32) -> (i32, i32) {
    %c0_i32 = arith.constant 0 : i32
    %c0_i32_0 = arith.constant 0 : i32
    %c0_i32_1 = arith.constant 0 : i32
    return %c0_i32, %c0_i32_0 : i32, i32
  }
  func.func @transform_2(%arg0: i32) -> (i32, i32) {
    %c0_i32 = arith.constant 0 : i32
    %c0_i32_0 = arith.constant 0 : i32
    %c0_i32_1 = arith.constant 0 : i32
    return %c0_i32, %c0_i32_0 : i32, i32
  }
  func.func @transform_3(%arg0: i32) -> (i32, i32) {
    %c0_i32 = arith.constant 0 : i32
    %c0_i32_0 = arith.constant 0 : i32
    return %arg0, %c0_i32 : i32, i32
  }
}

</mosaic_0001>

<bundles_post_ra>
// kernel: _forward_gemm.1
= control target key start
LH: loop header
LB: loop body
LE: loop exit
PB: predicated region body
PF: predicated region fallthrough
CT: control target
= control target key end

     0   :  { %v488_v2 = vmov 0.0   ;;  %vm489_vm0 = vmmov 0   ;;  %s609_s0 = inlined_call_operand.vmem [shape: bf16[16,384], index: 0, kind: input, shape index: {}]   ;;  %s610_s1 = inlined_call_operand.vmem [shape: bf16[384,128], index: 1, kind: input, shape index: {}]   ;;  %s611_s2 = inlined_call_operand.vmem [shape: f32[1,128], index: 2, kind: input, shape index: {}]   ;;  %s612_s3 = inlined_call_operand.hbm [shape: bf16[16,128], index: 3, kind: output, shape index: {}]  }
   0x1   :  { %v436_v0 = vld [vmem:[%s610_s1 + $0x40] sm:$0xff]   ;;  %411 = vmatprep.subr.bf16.mxu1 %v488_v2  ;;  %427 = vmatprep.mubr.msk.bf16.mxu1 %vm489_vm0, %v488_v2  ;;  %v439_v4 = vld [vmem:[%s610_s1 + $0x48] sm:$0xff]   ;;  %v442_v7 = vld [vmem:[%s610_s1 + $0x50] sm:$0xff]  }
   0x2   :  { %v437_v1 = vld [vmem:[%s610_s1] sm:$0xff]   ;;  %380 = vmatprep.subr.bf16.mxu0 %v436_v0  ;;  %v440_v5 = vld [vmem:[%s610_s1 + $0x8] sm:$0xff]   ;;  %v443_v8 = vld [vmem:[%s610_s1 + $0x10] sm:$0xff]  }
   0x3   :  { %v438_v3 = vld [vmem:[%s610_s1 + $0x80] sm:$0xff]   ;;  %381 = vmatpush3.bf16.msra.mxu0 %v437_v1  ;;  %v441_v6 = vld [vmem:[%s610_s1 + $0x88] sm:$0xff]   ;;  %v444_v9 = vld [vmem:[%s610_s1 + $0x90] sm:$0xff]  }
   0x4   :  { %412 = vmatpush3.bf16.msra.mxu1 %v438_v3  ;;  %382 = vmatprep.subr.bf16.mxu0 %v439_v4  ;;  %v445_v10 = vld [vmem:[%s610_s1 + $0x58] sm:$0xff]   ;;  %v448_v13 = vld [vmem:[%s610_s1 + $0x60] sm:$0xff]   ;;  %v451_v16 = vld [vmem:[%s610_s1 + $0x68] sm:$0xff]  }
   0x5   :  { %413 = vmatprep.subr.bf16.mxu1 %v488_v2  ;;  %v446_v11 = vld [vmem:[%s610_s1 + $0x18] sm:$0xff]   ;;  %v449_v14 = vld [vmem:[%s610_s1 + $0x20] sm:$0xff]   ;;  %v452_v17 = vld [vmem:[%s610_s1 + $0x28] sm:$0xff]  }
   0x6   :  { %v447_v12 = vld [vmem:[%s610_s1 + $0x98] sm:$0xff]   ;;  %v450_v15 = vld [vmem:[%s610_s1 + $0xa0] sm:$0xff]   ;;  %v453_v18 = vld [vmem:[%s610_s1 + $0xa8] sm:$0xff]  }
   0x7   :  { %383 = vmatpush3.bf16.msra.mxu0 %v440_v5  ;;  %v454_v19 = vld [vmem:[%s610_s1 + $0x70] sm:$0xff]   ;;  %v457_v22 = vld [vmem:[%s610_s1 + $0x78] sm:$0xff]  }
   0x8   :  { %414 = vmatpush3.bf16.msra.mxu1 %v441_v6  ;;  %384 = vmatprep.subr.bf16.mxu0 %v442_v7  ;;  %v455_v20 = vld [vmem:[%s610_s1 + $0x30] sm:$0xff]  }
   0x9   :  { %415 = vmatprep.subr.bf16.mxu1 %v488_v2  ;;  %v456_v21 = vld [vmem:[%s610_s1 + $0xb0] sm:$0xff]  }
   0xa   :  { %v461_v23 = vld [vmem:[%s609_s0 + $0x4] ss:$12 sps:$4 sm:$0xff]  }
   0xb   :  { %385 = vmatpush3.bf16.msra.mxu0 %v443_v8  ;;  %267 = vmatprep.mubr.bf16.mxu0 %v461_v23 }
   0xc   :  { %416 = vmatpush3.bf16.msra.mxu1 %v444_v9  ;;  %386 = vmatprep.subr.bf16.mxu0 %v445_v10 }
   0xd   :  { %417 = vmatprep.subr.bf16.mxu1 %v488_v2 }
   0xf   :  { %387 = vmatpush3.bf16.msra.mxu0 %v446_v11 }
  0x10   :  { %418 = vmatpush3.bf16.msra.mxu1 %v447_v12  ;;  %388 = vmatprep.subr.bf16.mxu0 %v448_v13 }
  0x11   :  { %419 = vmatprep.subr.bf16.mxu1 %v488_v2 }
  0x13   :  { %389 = vmatpush3.bf16.msra.mxu0 %v449_v14 }
  0x14   :  { %420 = vmatpush3.bf16.msra.mxu1 %v450_v15  ;;  %390 = vmatprep.subr.bf16.mxu0 %v451_v16 }
  0x15   :  { %421 = vmatprep.subr.bf16.mxu1 %v488_v2 }
  0x17   :  { %391 = vmatpush3.bf16.msra.mxu0 %v452_v17 }
  0x18   :  { %422 = vmatpush3.bf16.msra.mxu1 %v453_v18  ;;  %392 = vmatprep.subr.bf16.mxu0 %v454_v19 }
  0x19   :  { %423 = vmatprep.subr.bf16.mxu1 %v488_v2 }
  0x1a   :  { %8 = vsyncpa [#allocation3], 0  ;;  %v458_v24 = vld [vmem:[%s610_s1 + $0x38] sm:$0xff]   ;;  %v459_v26 = vld [vmem:[%s609_s0] ss:$12 sps:$4 sm:$0xff]  }
  0x1b   :  { %393 = vmatpush3.bf16.msra.mxu0 %v455_v20  ;;  %v462_v25 = vld [vmem:[%s610_s1 + $0xb8] sm:$0xff]   ;;  %v463_v27 = vld [vmem:[%s609_s0 + $0x8] ss:$12 sps:$4 sm:$0xff]   ;;  %v343_v30 = vld [vmem:[%s611_s2] ss:$0 sm:$0xff]  ;;  %s490_s0 = smov [#allocation2]  }
  0x1c   :  { %424 = vmatpush3.bf16.msra.mxu1 %v456_v21  ;;  %394 = vmatprep.subr.bf16.mxu0 %v457_v22  ;;  %s332_s1 = sshll.u32 %s490_s0, 4  ;;  %s333_s1 = int_to_ptr.vmem [resolvable:$true] %s332_s1 }
  0x1d   :  { %425 = vmatprep.subr.bf16.mxu1 %v488_v2  ;;  %s464_s14 = scalar_lea.vmem %s333_s1, 128  ;;  %p469_p1 = scmp.lt.s32.totalorder %s333_s1, %s333_s1 }
  0x1e   :  { %p465_p0 = scmp.ne.s32.totalorder %s333_s1, %s464_s14  ;;  %p470_p2 = scmp.lt.s32.totalorder %s464_s14, %s464_s14 }
  0x1f   :  { %395 = vmatpush3.bf16.msra.mxu0 %v458_v24 }
  0x20   :  { %426 = vmatpush3.bf16.msra.mxu1 %v462_v25  ;;  %p471_p3 = por %p470_p2, %p469_p1 }
  0x22   :  { %268 = vmatmul.mubr.bf16.vlgmr.msra.gmra.mrb[0].mxu0 %v459_v26  ;;  %p472_p4 = pnand %p471_p3, %p465_p0 }
  0x23   :  { %428 = vmatmul.mubr.bf16.vlgmr.msra.gmra.mrb[0].mxu1 %v463_v27 }
  0xf5   :  { %v396_v28 = vpop.f32.mrb[0].mxu0 }
  0xf6   :  { %v397_v29 = vpop.f32.mrb[1].mxu0  ;;  %v310_v31 = vpop.f32.mrb[0].mxu1 }
  0xf7   :  { %v398_v32 = vadd.f32 %v397_v29, %v396_v28  ;;  %v399_v33 = vpop.f32.mrb[2].mxu0  ;;  %v429_v34 = vpop.f32.mrb[1].mxu1 }
  0xf8   :  { %v400_v35 = vpop.f32.mrb[3].mxu0  ;;  %v313_v36 = vpop.f32.mrb[2].mxu1 }
  0xf9   :  { %v270_v37 = vadd.f32 %v398_v32, %v343_v30  ;;  %v401_v38 = vadd.f32 %v400_v35, %v399_v33  ;;  %v430_v39 = vpop.f32.mrb[3].mxu1 }
  0xfb   :  { %v311_v40 = vadd.f32 %v310_v31, %v270_v37  ;;  %v273_v41 = vadd.f32 %v401_v38, %v343_v30 }
  0xfd   :  { %v314_v42 = vadd.f32 %v313_v36, %v273_v41 }
  0xff   :  { %v378_v43 = vpack.c.bf16 %v314_v42, %v311_v40 }
 0x101   :  { %379 = vst [vmem:[#allocation2] sm:$0xff] %v378_v43  }
 0x102   :  { %475 = shalt.err (!%p472_p4)
}
 0x103   :  { %s476_s16 = scalar_lea.hbm %s612_s3, 128 }
 0x104   :  { %p477_p5 = scmp.ne.s32.totalorder %s612_s3, %s476_s16  ;;  %p480_p6 = scmp.lt.u32.totalorder %s476_s16, %s612_s3 }
 0x106   :  { %p482_p7 = pnand %p480_p6, %p477_p5 }
 0x108   :  { %485 = shalt.err (!%p482_p7)
}
 0x109   :  { %s491_s21 = smov 64   ;;  %s492_s22 = smov 4  }
 0x10a   :  { %338 = dma.vmem_to_hbm [thread:$0]  %s333_s1, 128, %s612_s3, [#allocation3], %s491_s21, %s491_s21, %s492_s22  }
 0x10b   :  { %486 = dma.done.wait [#allocation3], 128  }
 0x10c   :  { %487 = vsyncadd [#allocation3], 4294967168 }
 0x10d   :  { %342 = vsyncpa [#allocation3], 1 }

</bundles_post_ra>
